<compile_context>
chip_gen: v7x
topology: tpu7x:2x2x1
jax: 0.10.0
libtpu: 0.0.40
codegen_flags: <defaults>
</compile_context>

<pallas_src>
import functools

import jax
import jax.numpy as jnp
from jax.experimental import pallas as pl
from jax.experimental.pallas import tpu as pltpu

EPS = 1e-5
_VMEM_LIMIT = 32 * 1024 * 1024  # safe on v5e/v6e (128 MiB phys) and v7x (64 MiB phys)


def _mlp_f32(x, w1, b1, w2, b2, w3, b3):
    """3x (matmul + bias + ReLU) in f32 on the MXU/VPU."""
    h = jnp.dot(x, w1, preferred_element_type=jnp.float32)
    h = jnp.maximum(h + b1, 0.0)
    h = jnp.dot(h, w2, preferred_element_type=jnp.float32)
    h = jnp.maximum(h + b2, 0.0)
    h = jnp.dot(h, w3, preferred_element_type=jnp.float32)
    h = jnp.maximum(h + b3, 0.0)
    return h


# ---------------------------------------------------------------------------
# Pass 1: accumulate per-feature sum / sum-of-squares across row tiles,
#         finalize BN affine (scale, shift) on the last tile.
# ---------------------------------------------------------------------------
def _make_stats_kernel(n_rows, tile_n):
    def stats_kernel(x_ref, w1_ref, b1_ref, w2_ref, b2_ref, w3_ref, b3_ref,
                     gamma_ref, beta_ref, stats_ref, sum_sc, sq_sc):
        i = pl.program_id(0)

        @pl.when(i == 0)
        def _init():
            sum_sc[...] = jnp.zeros_like(sum_sc)
            sq_sc[...] = jnp.zeros_like(sq_sc)

        x = x_ref[...].astype(jnp.float32)
        h = _mlp_f32(x, w1_ref[...], b1_ref[...], w2_ref[...], b2_ref[...],
                     w3_ref[...], b3_ref[...])

        # Mask rows that are padding (N rounded up to a multiple of tile_n).
        row = jax.lax.broadcasted_iota(jnp.int32, (tile_n, 1), 0) + i * tile_n
        valid = row < n_rows
        hm = jnp.where(valid, h, 0.0)

        sum_sc[...] += jnp.sum(hm, axis=0, keepdims=True)
        sq_sc[...] += jnp.sum(hm * hm, axis=0, keepdims=True)

        @pl.when(i == pl.num_programs(0) - 1)
        def _finalize():
            inv_n = 1.0 / float(n_rows)
            mean = sum_sc[...] * inv_n
            var = jnp.maximum(sq_sc[...] * inv_n - mean * mean, 0.0)  # biased (training-mode) var
            rstd = jax.lax.rsqrt(var + EPS)
            scale = gamma_ref[...] * rstd
            shift = beta_ref[...] - mean * scale
            stats_ref[...] = jnp.concatenate([scale, shift], axis=0)

    return stats_kernel


# ---------------------------------------------------------------------------
# Pass 2: recompute the tiny MLP per tile and apply the fused BN affine.
# ---------------------------------------------------------------------------
def _normalize_kernel(x_ref, w1_ref, b1_ref, w2_ref, b2_ref, w3_ref, b3_ref,
                      stats_ref, o_ref):
    x = x_ref[...].astype(jnp.float32)
    h = _mlp_f32(x, w1_ref[...], b1_ref[...], w2_ref[...], b2_ref[...],
                 w3_ref[...], b3_ref[...])
    stats = stats_ref[...]
    scale = stats[0:1, :]
    shift = stats[1:2, :]
    # Dropout(p=0.0) is the identity.
    o_ref[...] = (h * scale + shift).astype(o_ref.dtype)


def _const_spec(arr):
    nd = arr.ndim
    return pl.BlockSpec(arr.shape, lambda i, _nd=nd: (0,) * _nd)


def ginmlp_forward(x, params, *, tile_n=512):
    """GINMLP forward. Output dtype follows x.dtype (pass bf16 x for bf16 I/O)."""
    w1, b1, w2, b2, w3, b3, gamma, beta = params
    n, fin = x.shape
    fout = w3.shape[1]
    out_dtype = x.dtype

    # ---- lane-dense feature padding (out_feats -> multiple of 128) ----
    f_pad = max(128, int(pl.cdiv(fout, 128)) * 128)

    def pad_to(a, rows, cols):
        return jnp.pad(a, ((0, rows - a.shape[0]), (0, cols - a.shape[1])))

    w1p = pad_to(w1, fin, f_pad)
    w2p = pad_to(w2, f_pad, f_pad)
    w3p = pad_to(w3, f_pad, f_pad)
    b1p = pad_to(b1, 1, f_pad)
    b2p = pad_to(b2, 1, f_pad)
    b3p = pad_to(b3, 1, f_pad)
    gp = pad_to(gamma, 1, f_pad)   # zero-padded gamma => padded output lanes are exactly 0
    bp = pad_to(beta, 1, f_pad)

    # ---- row tiling (tile must be a multiple of 8; pad N so every tile is full) ----
    tile_n = int(pl.cdiv(min(int(tile_n), n), 8)) * 8
    n_pad = int(pl.cdiv(n, tile_n)) * tile_n
    grid = (n_pad // tile_n,)
    xp = jnp.pad(x, ((0, n_pad - n), (0, 0)))

    x_spec = pl.BlockSpec((tile_n, fin), lambda i: (i, 0))
    weight_specs = [_const_spec(a) for a in (w1p, b1p, w2p, b2p, w3p, b3p)]

    # ---- pass 1: batch statistics -> fused affine (scale, shift) ----
    stats = pl.pallas_call(
        _make_stats_kernel(n, tile_n),
        out_shape=jax.ShapeDtypeStruct((2, f_pad), jnp.float32),
        grid_spec=pltpu.PrefetchScalarGridSpec(
            num_scalar_prefetch=0,
            grid=grid,
            in_specs=[x_spec] + weight_specs + [_const_spec(gp), _const_spec(bp)],
            out_specs=pl.BlockSpec((2, f_pad), lambda i: (0, 0)),
            scratch_shapes=[pltpu.VMEM((1, f_pad), jnp.float32),
                            pltpu.VMEM((1, f_pad), jnp.float32)],
        ),
        compiler_params=pltpu.CompilerParams(
            dimension_semantics=("arbitrary",),   # sequential accumulation across tiles
            vmem_limit_bytes=_VMEM_LIMIT,
        ),
    )(xp, w1p, b1p, w2p, b2p, w3p, b3p, gp, bp)

    # ---- pass 2: recompute MLP per tile, apply affine, lane-dense store ----
    out_padded = pl.pallas_call(
        _normalize_kernel,
        out_shape=jax.ShapeDtypeStruct((n_pad, f_pad), out_dtype),
        grid_spec=pltpu.PrefetchScalarGridSpec(
            num_scalar_prefetch=0,
            grid=grid,
            in_specs=[x_spec] + weight_specs + [_const_spec(stats)],
            out_specs=pl.BlockSpec((tile_n, f_pad), lambda i: (i, 0)),
        ),
        compiler_params=pltpu.CompilerParams(
            dimension_semantics=("parallel",),    # independent tiles -> v7x megacore
            vmem_limit_bytes=_VMEM_LIMIT,
        ),
    )(xp, w1p, b1p, w2p, b2p, w3p, b3p, stats)

    return out_padded[:n, :fout]


# ---------------------------------------------------------------------------
# Parameters / reference
# ---------------------------------------------------------------------------
def init_params(key, in_feats, out_feats=64, layer_nums=3):
    # Deterministic synthetic init (PyTorch-Linear-like uniform bounds).
    params = []
    fan_ins = [in_feats] + [out_feats] * (layer_nums - 1)
    for fin in fan_ins:
        key, kw, kb = jax.random.split(key, 3)
        bound = 1.0 / float(jnp.sqrt(fin))
        # stored pre-transposed: [in, out]
        w = jax.random.uniform(kw, (fin, out_feats), jnp.float32, -bound, bound)
        b = jax.random.uniform(kb, (1, out_feats), jnp.float32, -bound, bound)
        params += [w, b]
    gamma = jnp.ones((1, out_feats), jnp.float32)
    beta = jnp.zeros((1, out_feats), jnp.float32)
    params += [gamma, beta]
    return tuple(params)


def reference_forward(x, params):
    (w1, b1, w2, b2, w3, b3, gamma, beta) = params
    h = jnp.maximum(x @ w1 + b1, 0.0)
    h = jnp.maximum(h @ w2 + b2, 0.0)
    h = jnp.maximum(h @ w3 + b3, 0.0)
    mean = jnp.mean(h, axis=0, keepdims=True)
    var = jnp.mean((h - mean) ** 2, axis=0, keepdims=True)
    return (h - mean) / jnp.sqrt(var + EPS) * gamma + beta


if __name__ == "__main__":
    N, in_feats, out_feats = 200, 32, 64   # N=200 with tile_n=128 -> 2 tiles, ragged last tile

    key = jax.random.PRNGKey(0)
    key, kx = jax.random.split(key)
    x = jax.random.normal(kx, (N, in_feats), jnp.float32)
    params = init_params(key, in_feats, out_feats, layer_nums=3)

    ref = reference_forward(x, params)

    # f32 I/O run (tight correctness check).
    out = ginmlp_forward(x, params, tile_n=128)
    out = jax.block_until_ready(out)
    assert out.shape == (N, out_feats)
    assert jnp.allclose(out, ref, atol=2e-4, rtol=2e-4), float(jnp.max(jnp.abs(out - ref)))

    # bf16 I/O run (halves x/out DMA bytes; in-kernel math stays f32).
    out_bf16 = ginmlp_forward(x.astype(jnp.bfloat16), params, tile_n=128)
    out_bf16 = jax.block_until_ready(out_bf16)
    assert out_bf16.shape == (N, out_feats)
    assert out_bf16.dtype == jnp.bfloat16
    assert jnp.allclose(out_bf16.astype(jnp.float32), ref, atol=1e-1, rtol=1e-1)

    print("KERNEL_OK")
</pallas_src>

<mosaic_0001>
module attributes {stable_mosaic.version = 11 : i64} {
  func.func @stats_kernel(%arg0: i32, %arg1: memref<128x32xf32, #tpu.memory_space<vmem>>, %arg2: memref<32x128xf32, #tpu.memory_space<vmem>>, %arg3: memref<1x128xf32, #tpu.memory_space<vmem>>, %arg4: memref<128x128xf32, #tpu.memory_space<vmem>>, %arg5: memref<1x128xf32, #tpu.memory_space<vmem>>, %arg6: memref<128x128xf32, #tpu.memory_space<vmem>>, %arg7: memref<1x128xf32, #tpu.memory_space<vmem>>, %arg8: memref<1x128xf32, #tpu.memory_space<vmem>>, %arg9: memref<1x128xf32, #tpu.memory_space<vmem>>, %arg10: memref<2x128xf32, #tpu.memory_space<vmem>>, %arg11: memref<1x128xf32, #tpu.memory_space<vmem>>, %arg12: memref<1x128xf32, #tpu.memory_space<vmem>>) attributes {dimension_semantics = [#tpu.dimension_semantics<arbitrary>], iteration_bounds = array<i64: 2>, scalar_prefetch = 0 : i64, scratch_operands = 2 : i64, tpu.core_type = #tpu.core_type<tc>, window_params = [{transform_indices = @transform_0, window_bounds = array<i64: 128, 32>}, {pipeline_mode = #tpu.pipeline_mode<synchronous>, transform_indices = @transform_1, window_bounds = array<i64: 32, 128>}, {pipeline_mode = #tpu.pipeline_mode<synchronous>, transform_indices = @transform_2, window_bounds = array<i64: 1, 128>}, {pipeline_mode = #tpu.pipeline_mode<synchronous>, transform_indices = @transform_3, window_bounds = array<i64: 128, 128>}, {pipeline_mode = #tpu.pipeline_mode<synchronous>, transform_indices = @transform_4, window_bounds = array<i64: 1, 128>}, {pipeline_mode = #tpu.pipeline_mode<synchronous>, transform_indices = @transform_5, window_bounds = array<i64: 128, 128>}, {pipeline_mode = #tpu.pipeline_mode<synchronous>, transform_indices = @transform_6, window_bounds = array<i64: 1, 128>}, {pipeline_mode = #tpu.pipeline_mode<synchronous>, transform_indices = @transform_7, window_bounds = array<i64: 1, 128>}, {pipeline_mode = #tpu.pipeline_mode<synchronous>, transform_indices = @transform_8, window_bounds = array<i64: 1, 128>}, {pipeline_mode = #tpu.pipeline_mode<synchronous>, transform_indices = @transform_9, window_bounds = array<i64: 2, 128>}]} {
    %c0_i32 = arith.constant 0 : i32
    %0 = arith.cmpi eq, %arg0, %c0_i32 : i32
    %1 = arith.extui %0 : i1 to i32
    %c0_i32_0 = arith.constant 0 : i32
    %2 = arith.cmpi ne, %1, %c0_i32_0 : i32
    scf.if %2 {
      %cst_31 = arith.constant 0.000000e+00 : f32
      %49 = vector.broadcast %cst_31 : f32 to vector<1x128xf32>
      %c0_32 = arith.constant 0 : index
      %c0_33 = arith.constant 0 : index
      %50 = vector.load %arg11[%c0_32, %c0_33] : memref<1x128xf32, #tpu.memory_space<vmem>>, vector<1x128xf32>
      tpu.vector_store %arg11[%c0_32, %c0_33], %49 {strides = array<i32>} : memref<1x128xf32, #tpu.memory_space<vmem>>, vector<1x128xf32>,
      %cst_34 = arith.constant 0.000000e+00 : f32
      %51 = vector.broadcast %cst_34 : f32 to vector<1x128xf32>
      %c0_35 = arith.constant 0 : index
      %c0_36 = arith.constant 0 : index
      %52 = vector.load %arg12[%c0_35, %c0_36] : memref<1x128xf32, #tpu.memory_space<vmem>>, vector<1x128xf32>
      tpu.vector_store %arg12[%c0_35, %c0_36], %51 {strides = array<i32>} : memref<1x128xf32, #tpu.memory_space<vmem>>, vector<1x128xf32>,
    } else {
    }
    %c0 = arith.constant 0 : index
    %c0_1 = arith.constant 0 : index
    %3 = vector.load %arg1[%c0, %c0_1] : memref<128x32xf32, #tpu.memory_space<vmem>>, vector<128x32xf32>
    %c0_2 = arith.constant 0 : index
    %c0_3 = arith.constant 0 : index
    %4 = vector.load %arg2[%c0_2, %c0_3] : memref<32x128xf32, #tpu.memory_space<vmem>>, vector<32x128xf32>
    %c0_4 = arith.constant 0 : index
    %c0_5 = arith.constant 0 : index
    %5 = vector.load %arg3[%c0_4, %c0_5] : memref<1x128xf32, #tpu.memory_space<vmem>>, vector<1x128xf32>
    %c0_6 = arith.constant 0 : index
    %c0_7 = arith.constant 0 : index
    %6 = vector.load %arg4[%c0_6, %c0_7] : memref<128x128xf32, #tpu.memory_space<vmem>>, vector<128x128xf32>
    %c0_8 = arith.constant 0 : index
    %c0_9 = arith.constant 0 : index
    %7 = vector.load %arg5[%c0_8, %c0_9] : memref<1x128xf32, #tpu.memory_space<vmem>>, vector<1x128xf32>
    %c0_10 = arith.constant 0 : index
    %c0_11 = arith.constant 0 : index
    %8 = vector.load %arg6[%c0_10, %c0_11] : memref<128x128xf32, #tpu.memory_space<vmem>>, vector<128x128xf32>
    %c0_12 = arith.constant 0 : index
    %c0_13 = arith.constant 0 : index
    %9 = vector.load %arg7[%c0_12, %c0_13] : memref<1x128xf32, #tpu.memory_space<vmem>>, vector<1x128xf32>
    %cst = arith.constant dense<0.000000e+00> : vector<128x128xf32>
    %10 = tpu.matmul %3, %4, %cst {dimension_numbers = #tpu.dot_dimension_numbers<[1], [0], [0], [1], [0, 0, 1, 1], [], []>} : vector<128x32xf32>, vector<32x128xf32>, vector<128x128xf32> -> vector<128x128xf32>
    %11 = vector.broadcast %5 : vector<1x128xf32> to vector<128x128xf32>
    %12 = arith.addf %10, %11 : vector<128x128xf32>
    %cst_14 = arith.constant 0.000000e+00 : f32
    %13 = vector.broadcast %cst_14 : f32 to vector<128x128xf32>
    %14 = arith.maximumf %12, %13 : vector<128x128xf32>
    %cst_15 = arith.constant dense<0.000000e+00> : vector<128x128xf32>
    %15 = tpu.matmul %14, %6, %cst_15 {dimension_numbers = #tpu.dot_dimension_numbers<[1], [0], [0], [1], [0, 0, 1, 1], [], []>} : vector<128x128xf32>, vector<128x128xf32>, vector<128x128xf32> -> vector<128x128xf32>
    %16 = vector.broadcast %7 : vector<1x128xf32> to vector<128x128xf32>
    %17 = arith.addf %15, %16 : vector<128x128xf32>
    %cst_16 = arith.constant 0.000000e+00 : f32
    %18 = vector.broadcast %cst_16 : f32 to vector<128x128xf32>
    %19 = arith.maximumf %17, %18 : vector<128x128xf32>
    %cst_17 = arith.constant dense<0.000000e+00> : vector<128x128xf32>
    %20 = tpu.matmul %19, %8, %cst_17 {dimension_numbers = #tpu.dot_dimension_numbers<[1], [0], [0], [1], [0, 0, 1, 1], [], []>} : vector<128x128xf32>, vector<128x128xf32>, vector<128x128xf32> -> vector<128x128xf32>
    %21 = vector.broadcast %9 : vector<1x128xf32> to vector<128x128xf32>
    %22 = arith.addf %20, %21 : vector<128x128xf32>
    %cst_18 = arith.constant 0.000000e+00 : f32
    %23 = vector.broadcast %cst_18 : f32 to vector<128x128xf32>
    %24 = arith.maximumf %22, %23 : vector<128x128xf32>
    %25 = tpu.iota {dimensions = array<i32: 0>} : vector<128x1xi32>
    %c128_i32 = arith.constant 128 : i32
    %26 = arith.muli %arg0, %c128_i32 : i32
    %27 = vector.broadcast %26 : i32 to vector<128x1xi32>
    %28 = arith.addi %25, %27 : vector<128x1xi32>
    %c200_i32 = arith.constant 200 : i32
    %29 = vector.broadcast %c200_i32 : i32 to vector<128x1xi32>
    %30 = arith.cmpi slt, %28, %29 : vector<128x1xi32>
    %cst_19 = arith.constant 0.000000e+00 : f32
    %31 = vector.shape_cast %30 : vector<128x1xi1> to vector<128x1xi1>
    %32 = vector.broadcast %31 : vector<128x1xi1> to vector<128x128xi1>
    %33 = vector.broadcast %cst_19 : f32 to vector<128x128xf32>
    %34 = arith.select %32, %24, %33 : vector<128x128xi1>, vector<128x128xf32>
    %c0_20 = arith.constant 0 : index
    %c0_21 = arith.constant 0 : index
    %35 = vector.load %arg11[%c0_20, %c0_21] : memref<1x128xf32, #tpu.memory_space<vmem>>, vector<1x128xf32>
    %cst_22 = arith.constant dense<0.000000e+00> : vector<128xf32>
    %36 = vector.multi_reduction <add>, %34, %cst_22 [0] : vector<128x128xf32> to vector<128xf32>
    %37 = vector.shape_cast %36 : vector<128xf32> to vector<1x128xf32>
    %38 = arith.addf %35, %37 : vector<1x128xf32>
    %c0_23 = arith.constant 0 : index
    %c0_24 = arith.constant 0 : index
    %39 = vector.load %arg11[%c0_23, %c0_24] : memref<1x128xf32, #tpu.memory_space<vmem>>, vector<1x128xf32>
    tpu.vector_store %arg11[%c0_23, %c0_24], %38 {strides = array<i32>} : memref<1x128xf32, #tpu.memory_space<vmem>>, vector<1x128xf32>,
    %c0_25 = arith.constant 0 : index
    %c0_26 = arith.constant 0 : index
    %40 = vector.load %arg12[%c0_25, %c0_26] : memref<1x128xf32, #tpu.memory_space<vmem>>, vector<1x128xf32>
    %41 = arith.mulf %34, %34 : vector<128x128xf32>
    %cst_27 = arith.constant dense<0.000000e+00> : vector<128xf32>
    %42 = vector.multi_reduction <add>, %41, %cst_27 [0] : vector<128x128xf32> to vector<128xf32>
    %43 = vector.shape_cast %42 : vector<128xf32> to vector<1x128xf32>
    %44 = arith.addf %40, %43 : vector<1x128xf32>
    %c0_28 = arith.constant 0 : index
    %c0_29 = arith.constant 0 : index
    %45 = vector.load %arg12[%c0_28, %c0_29] : memref<1x128xf32, #tpu.memory_space<vmem>>, vector<1x128xf32>
    tpu.vector_store %arg12[%c0_28, %c0_29], %44 {strides = array<i32>} : memref<1x128xf32, #tpu.memory_space<vmem>>, vector<1x128xf32>,
    %c1_i32 = arith.constant 1 : i32
    %46 = arith.cmpi eq, %arg0, %c1_i32 : i32
    %47 = arith.extui %46 : i1 to i32
    %c0_i32_30 = arith.constant 0 : i32
    %48 = arith.cmpi ne, %47, %c0_i32_30 : i32
    scf.if %48 {
      %c0_31 = arith.constant 0 : index
      %c0_32 = arith.constant 0 : index
      %49 = vector.load %arg11[%c0_31, %c0_32] : memref<1x128xf32, #tpu.memory_space<vmem>>, vector<1x128xf32>
      %cst_33 = arith.constant 5.000000e-03 : f32
      %50 = vector.broadcast %cst_33 : f32 to vector<1x128xf32>
      %51 = arith.mulf %49, %50 : vector<1x128xf32>
      %c0_34 = arith.constant 0 : index
      %c0_35 = arith.constant 0 : index
      %52 = vector.load %arg12[%c0_34, %c0_35] : memref<1x128xf32, #tpu.memory_space<vmem>>, vector<1x128xf32>
      %cst_36 = arith.constant 5.000000e-03 : f32
      %53 = vector.broadcast %cst_36 : f32 to vector<1x128xf32>
      %54 = arith.mulf %52, %53 : vector<1x128xf32>
      %55 = arith.mulf %51, %51 : vector<1x128xf32>
      %56 = arith.subf %54, %55 : vector<1x128xf32>
      %cst_37 = arith.constant 0.000000e+00 : f32
      %57 = vector.broadcast %cst_37 : f32 to vector<1x128xf32>
      %58 = arith.maximumf %56, %57 : vector<1x128xf32>
      %cst_38 = arith.constant 9.99999974E-6 : f32
      %59 = vector.broadcast %cst_38 : f32 to vector<1x128xf32>
      %60 = arith.addf %58, %59 : vector<1x128xf32>
      %61 = math.rsqrt %60 : vector<1x128xf32>
      %c0_39 = arith.constant 0 : index
      %c0_40 = arith.constant 0 : index
      %62 = vector.load %arg8[%c0_39, %c0_40] : memref<1x128xf32, #tpu.memory_space<vmem>>, vector<1x128xf32>
      %63 = arith.mulf %62, %61 : vector<1x128xf32>
      %c0_41 = arith.constant 0 : index
      %c0_42 = arith.constant 0 : index
      %64 = vector.load %arg9[%c0_41, %c0_42] : memref<1x128xf32, #tpu.memory_space<vmem>>, vector<1x128xf32>
      %65 = arith.mulf %51, %63 : vector<1x128xf32>
      %66 = arith.subf %64, %65 : vector<1x128xf32>
      %67 = tpu.concatenate %63, %66 in 0 : vector<1x128xf32>, vector<1x128xf32> -> vector<2x128xf32>
      %c0_43 = arith.constant 0 : index
      %c0_44 = arith.constant 0 : index
      %68 = vector.load %arg10[%c0_43, %c0_44] : memref<2x128xf32, #tpu.memory_space<vmem>>, vector<2x128xf32>
      tpu.vector_store %arg10[%c0_43, %c0_44], %67 {strides = array<i32>} : memref<2x128xf32, #tpu.memory_space<vmem>>, vector<2x128xf32>,
    } else {
    }
    return
  }
  func.func @transform_0(%arg0: i32) -> (i32, i32) {
    %c0_i32 = arith.constant 0 : i32
    %c0_i32_0 = arith.constant 0 : i32
    return %arg0, %c0_i32 : i32, i32
  }
  func.func @transform_1(%arg0: i32) -> (i32, i32) {
    %c0_i32 = arith.constant 0 : i32
    %c0_i32_0 = arith.constant 0 : i32
    %c0_i32_1 = arith.constant 0 : i32
    return %c0_i32, %c0_i32_0 : i32, i32
  }
  func.func @transform_2(%arg0: i32) -> (i32, i32) {
    %c0_i32 = arith.constant 0 : i32
    %c0_i32_0 = arith.constant 0 : i32
    %c0_i32_1 = arith.constant 0 : i32
    return %c0_i32, %c0_i32_0 : i32, i32
  }
  func.func @transform_3(%arg0: i32) -> (i32, i32) {
    %c0_i32 = arith.constant 0 : i32
    %c0_i32_0 = arith.constant 0 : i32
    %c0_i32_1 = arith.constant 0 : i32
    return %c0_i32, %c0_i32_0 : i32, i32
  }
  func.func @transform_4(%arg0: i32) -> (i32, i32) {
    %c0_i32 = arith.constant 0 : i32
    %c0_i32_0 = arith.constant 0 : i32
    %c0_i32_1 = arith.constant 0 : i32
    return %c0_i32, %c0_i32_0 : i32, i32
  }
  func.func @transform_5(%arg0: i32) -> (i32, i32) {
    %c0_i32 = arith.constant 0 : i32
    %c0_i32_0 = arith.constant 0 : i32
    %c0_i32_1 = arith.constant 0 : i32
    return %c0_i32, %c0_i32_0 : i32, i32
  }
  func.func @transform_6(%arg0: i32) -> (i32, i32) {
    %c0_i32 = arith.constant 0 : i32
    %c0_i32_0 = arith.constant 0 : i32
    %c0_i32_1 = arith.constant 0 : i32
    return %c0_i32, %c0_i32_0 : i32, i32
  }
  func.func @transform_7(%arg0: i32) -> (i32, i32) {
    %c0_i32 = arith.constant 0 : i32
    %c0_i32_0 = arith.constant 0 : i32
    %c0_i32_1 = arith.constant 0 : i32
    return %c0_i32, %c0_i32_0 : i32, i32
  }
  func.func @transform_8(%arg0: i32) -> (i32, i32) {
    %c0_i32 = arith.constant 0 : i32
    %c0_i32_0 = arith.constant 0 : i32
    %c0_i32_1 = arith.constant 0 : i32
    return %c0_i32, %c0_i32_0 : i32, i32
  }
  func.func @transform_9(%arg0: i32) -> (i32, i32) {
    %c0_i32 = arith.constant 0 : i32
    %c0_i32_0 = arith.constant 0 : i32
    %c0_i32_1 = arith.constant 0 : i32
    return %c0_i32, %c0_i32_0 : i32, i32
  }
}

</mosaic_0001>

<bundles_post_ra>
// kernel: tpu_custom_call.1
= control target key start
LH: loop header
LB: loop body
LE: loop exit
PB: predicated region body
PF: predicated region fallthrough
CT: control target
= control target key end

     0   :  { %14 = vsyncpa [#allocation5], 0  ;;  %s1624_s30 = smov 0   ;;  %s1942_s0 = inlined_call_operand.vmem [shape: f32[256,32], index: 0, kind: input, shape index: {}]   ;;  %s1943_s1 = inlined_call_operand.vmem [shape: f32[32,128], index: 1, kind: input, shape index: {}]   ;;  %s1944_s2 = inlined_call_operand.vmem [shape: f32[1,128], index: 2, kind: input, shape index: {}]   ;;  %s1945_s3 = inlined_call_operand.vmem [shape: f32[128,128], index: 3, kind: input, shape index: {}]   ;;  %s1946_s4 = inlined_call_operand.vmem [shape: f32[1,128], index: 4, kind: input, shape index: {}]   ;;  %s1947_s5 = inlined_call_operand.vmem [shape: f32[128,128], index: 5, kind: input, shape index: {}]   ;;  %s1948_s6 = inlined_call_operand.vmem [shape: f32[1,128], index: 6, kind: input, shape index: {}]   ;;  %s1949_s7 = inlined_call_operand.vmem [shape: f32[1,128], index: 7, kind: input, shape index: {}]   ;;  %s1950_s8 = inlined_call_operand.vmem [shape: f32[1,128], index: 8, kind: input, shape index: {}]   ;;  %s1951_s9 = inlined_call_operand.hbm [shape: f32[2,128], index: 9, kind: output, shape index: {}]  }
   0x1 LB: > { %s1630_s10 = sadd.s32 4294967295, %s1570_s30   ;;  %p1171_p0 = scmp.ge.s32.totalorder %s1570_s30, 1  ;;  %s1570_s30 = sphi %s1624_s30, %s20_s30  }
   0x2   : > { %p284_p1 = scmp.lt.s32.totalorder %s1570_s30, 3 }
   0x4   : > { %p285_p2 = pnand %p1171_p0, %p284_p1 }
   0x5   : > { %s1172_s11 = sshll.u32 (!%p285_p2), %s1630_s10, 4  ;;  %p1174_p4 = scmp.ne.s32.totalorder (!%p285_p2), %s1630_s10, 0 }
   0x6   : > { %288 = sbr.rel (%p285_p2) target bundleno = 795 (0x31b), region = 56  ;;  %p316_p3 = scmp.lt.s32.totalorder (!%p285_p2), %s1172_s11, 31 }
   0xd   : > { %s1953_s11 = smov (!%p316_p3, %s1172_s11), 31  ;;  %324 = sbr.rel (%p1174_p4) target bundleno = 20 (0x14), region = 60 }
   0xe   : > { %s1173_s12 = sshll.u32 %s1953_s11, 3  ;;  %v1572_v0 = vmov (!%p1174_p4), 0.0  }
   0xf   : > { %s1638_s15 = scalar_lea.vmem %s1942_s0, %s1173_s12  ;;  %325 = vst [vmem:[#allocation2] sm:$0x1] (!%p1174_p4), %v1572_v0  ;;  %326 = vst [vmem:[#allocation3] sm:$0x1] (!%p1174_p4), %v1572_v0 }
  0x14 PF: > { %v343_v1 = vld [vmem:[%s1943_s1] sm:$0xff]  ;;  %v344_v2 = vld [vmem:[%s1943_s1 + $0x8] sm:$0xff]  ;;  %v345_v3 = vld [vmem:[%s1943_s1 + $0x10] sm:$0xff]  ;;  %vm388_vm0 = vcmask 261120   ;;  %s1194_s18 = sshll.u32 %s1630_s10, 7  ;;  %p1195_p5 = scmp.ne.s32.totalorder %s1630_s10, 1 }
  0x15   : > { %v1428_v4 = vpack.c.bf16 %v344_v2, %v343_v1  ;;  %v346_v5 = vld [vmem:[%s1943_s1 + $0x18] sm:$0xff]  ;;  %v327_v6 = vld [vmem:[%s1638_s15] sm:$0xff]  ;;  %v349_v9 = vld [vmem:[%s1945_s3 + $0x8] sm:$0xff] }
  0x16   : > { %v1432_v7 = vpack.c.bf16 %v346_v5, %v345_v3  ;;  %1292 = vmatprep.mubr.msk.f32.mxu0 %vm388_vm0, %v327_v6  ;;  %v348_v8 = vld [vmem:[%s1945_s3] sm:$0xff]  ;;  %v350_v10 = vld [vmem:[%s1945_s3 + $0x10] sm:$0xff]  ;;  %v351_v11 = vld [vmem:[%s1945_s3 + $0x18] sm:$0xff] }
  0x17   : > { %1429 = vmatprep.subr.bf16.mxu0 %v1428_v4  ;;  %v328_v12 = vld [vmem:[%s1638_s15 + $0x8] sm:$0xff]  ;;  %v1436_v13 = vpack.c.bf16 %v349_v9, %v348_v8  ;;  %v1440_v14 = vpack.c.bf16 %v351_v11, %v350_v10  ;;  %v329_v15 = vld [vmem:[%s1638_s15 + $0x10] sm:$0xff]  ;;  %v352_v16 = vld [vmem:[%s1945_s3 + $0x20] sm:$0xff] }
  0x18   : > { %1431 = vmatpush3.bf16.msra.mxu0 %v1428_v4  ;;  %v353_v17 = vld [vmem:[%s1945_s3 + $0x28] sm:$0xff]  ;;  %v330_v18 = vld [vmem:[%s1638_s15 + $0x18] sm:$0xff]  ;;  %v331_v20 = vld [vmem:[%s1638_s15 + $0x20] sm:$0xff] }
  0x19   : > { %1433 = vmatprep.subr.bf16.mxu0 %v1432_v7  ;;  %1437 = vmatprep.subr.bf16.mxu1 %v1436_v13  ;;  %v1444_v19 = vpack.c.bf16 %v353_v17, %v352_v16  ;;  %v354_v21 = vld [vmem:[%s1945_s3 + $0x30] sm:$0xff]  ;;  %v355_v22 = vld [vmem:[%s1945_s3 + $0x38] sm:$0xff]  ;;  %v332_v23 = vld [vmem:[%s1638_s15 + $0x28] sm:$0xff] }
  0x1a   : > { %1439 = vmatpush3.bf16.msra.mxu1 %v1436_v13  ;;  %v1448_v24 = vpack.c.bf16 %v355_v22, %v354_v21  ;;  %v333_v25 = vld [vmem:[%s1638_s15 + $0x30] sm:$0xff]  ;;  %v356_v26 = vld [vmem:[%s1945_s3 + $0x40] sm:$0xff]  ;;  %v357_v27 = vld [vmem:[%s1945_s3 + $0x48] sm:$0xff] }
  0x1b   : > { %1441 = vmatprep.subr.bf16.mxu1 %v1440_v14  ;;  %v334_v28 = vld [vmem:[%s1638_s15 + $0x38] sm:$0xff]  ;;  %v1452_v29 = vpack.c.bf16 %v357_v27, %v356_v26  ;;  %v335_v30 = vld [vmem:[%s1638_s15 + $0x40] sm:$0xff]  ;;  %v358_v31 = vld [vmem:[%s1945_s3 + $0x50] sm:$0xff] }
  0x1c   : > { %1435 = vmatpush3.bf16.msra.mxu0 %v1432_v7  ;;  %v359_v32 = vld [vmem:[%s1945_s3 + $0x58] sm:$0xff]  ;;  %v336_v33 = vld [vmem:[%s1638_s15 + $0x48] sm:$0xff]  ;;  %v337_v35 = vld [vmem:[%s1638_s15 + $0x50] sm:$0xff] }
  0x1d   : > { %v1456_v34 = vpack.c.bf16 %v359_v32, %v358_v31  ;;  %v360_v36 = vld [vmem:[%s1945_s3 + $0x60] sm:$0xff]  ;;  %v361_v37 = vld [vmem:[%s1945_s3 + $0x68] sm:$0xff]  ;;  %v338_v38 = vld [vmem:[%s1638_s15 + $0x58] sm:$0xff] }
  0x1e   : > { %1443 = vmatpush3.bf16.msra.mxu1 %v1440_v14  ;;  %v1460_v39 = vpack.c.bf16 %v361_v37, %v360_v36  ;;  %v339_v40 = vld [vmem:[%s1638_s15 + $0x60] sm:$0xff]  ;;  %v340_v41 = vld [vmem:[%s1638_s15 + $0x68] sm:$0xff]  ;;  %v341_v42 = vld [vmem:[%s1638_s15 + $0x70] sm:$0xff] }
  0x1f   : > { %1293 = vmatmul.mubr.msk.f32.vlgmr.msra.gmra.mrb[0].mxu0 %vm388_vm0, %v328_v12  ;;  %1445 = vmatprep.subr.bf16.mxu1 %v1444_v19  ;;  %v342_v43 = vld [vmem:[%s1638_s15 + $0x78] sm:$0xff]  ;;  %v362_v44 = vld [vmem:[%s1945_s3 + $0x70] sm:$0xff]  ;;  %v365_v47 = vld [vmem:[%s1947_s5] sm:$0xff] }
  0x20   : > { %1295 = vmatprep.mubr.msk.f32.mxu0 %vm388_vm0, %v329_v15  ;;  %v363_v45 = vld [vmem:[%s1945_s3 + $0x78] sm:$0xff]  ;;  %v366_v48 = vld [vmem:[%s1947_s5 + $0x8] sm:$0xff]  ;;  %v367_v49 = vld [vmem:[%s1947_s5 + $0x10] sm:$0xff] }
  0x21   : > { %v1464_v46 = vpack.c.bf16 %v363_v45, %v362_v44  ;;  %v1468_v50 = vpack.c.bf16 %v366_v48, %v365_v47  ;;  %v368_v51 = vld [vmem:[%s1947_s5 + $0x18] sm:$0xff]  ;;  %v369_v53 = vld [vmem:[%s1947_s5 + $0x20] sm:$0xff]  ;;  %v370_v54 = vld [vmem:[%s1947_s5 + $0x28] sm:$0xff] }
  0x22   : > { %1447 = vmatpush3.bf16.msra.mxu1 %v1444_v19  ;;  %v1472_v52 = vpack.c.bf16 %v368_v51, %v367_v49  ;;  %v1476_v55 = vpack.c.bf16 %v370_v54, %v369_v53  ;;  %v371_v56 = vld [vmem:[%s1947_s5 + $0x30] sm:$0xff]  ;;  %v372_v57 = vld [vmem:[%s1947_s5 + $0x38] sm:$0xff]  ;;  %v373_v59 = vld [vmem:[%s1947_s5 + $0x40] sm:$0xff] }
  0x23   : > { %1296 = vmatmul.mubr.msk.f32.gmra.mrb[2].mxu0 %vm388_vm0, %v330_v18  ;;  %1449 = vmatprep.subr.bf16.mxu1 %v1448_v24  ;;  %v1757_v58 = vpack.c.bf16 %v372_v57, %v371_v56  ;;  %v374_v60 = vld [vmem:[%s1947_s5 + $0x48] sm:$0xff]  ;;  %v375_v62 = vld [vmem:[%s1947_s5 + $0x50] sm:$0xff]  ;;  %v376_v63 = vld [vmem:[%s1947_s5 + $0x58] sm:$0xff] }
  0x24   : > { %1298 = vmatprep.mubr.msk.f32.mxu0 %vm388_vm0, %v331_v20  ;;  %1469 = vmatprep.subr.bf16.mxu0 %v1468_v50  ;;  %v1766_v61 = vpack.c.bf16 %v374_v60, %v373_v59  ;;  %v1776_v0 = vpack.c.bf16 %v376_v63, %v375_v62  ;;  %v377_v1 = vld [vmem:[%s1947_s5 + $0x60] sm:$0xff]  ;;  %v378_v2 = vld [vmem:[%s1947_s5 + $0x68] sm:$0xff]  ;;  %v379_v53 = vld [vmem:[%s1947_s5 + $0x70] sm:$0xff] }
  0x25   : > { %1471 = vmatpush3.bf16.msra.mxu0 %v1468_v50  ;;  %v1786_v3 = vpack.c.bf16 %v378_v2, %v377_v1  ;;  %v1794_v4 = vld [vmem:[%s1944_s2] ss:$0 sm:$0xff]  ;;  %v380_v54 = vld [vmem:[%s1947_s5 + $0x78] sm:$0xff] }
  0x26   : > { %1451 = vmatpush3.bf16.msra.mxu1 %v1448_v24  ;;  %1473 = vmatprep.subr.bf16.mxu0 %v1472_v52  ;;  %v1192_v56 = vld [vmem:[%s1946_s4] ss:$0 sm:$0xff] }
  0x27   : > { %1299 = vmatmul.mubr.msk.f32.gmra.mrb[4].mxu0 %vm388_vm0, %v332_v23  ;;  %1453 = vmatprep.subr.bf16.mxu1 %v1452_v29 }
  0x28   : > { %1301 = vmatprep.mubr.msk.f32.mxu0 %vm388_vm0, %v333_v25 }
  0x29   : > { %1475 = vmatpush3.bf16.msra.mxu0 %v1472_v52 }
  0x2a   : > { %1455 = vmatpush3.bf16.msra.mxu1 %v1452_v29  ;;  %1477 = vmatprep.subr.bf16.mxu0 %v1476_v55 }
  0x2b   : > { %1302 = vmatmul.mubr.msk.f32.gmra.mrb[6].mxu0 %vm388_vm0, %v334_v28  ;;  %1457 = vmatprep.subr.bf16.mxu1 %v1456_v34 }
  0x2c   : > { %1304 = vmatprep.mubr.msk.f32.mxu0 %vm388_vm0, %v335_v30 }
  0x2d   : > { %1479 = vmatpush3.bf16.msra.mxu0 %v1476_v55 }
  0x2e   : > { %1459 = vmatpush3.bf16.msra.mxu1 %v1456_v34  ;;  %1481 = vmatprep.subr.bf16.mxu0 %v1757_v58 }
  0x2f   : > { %1305 = vmatmul.mubr.msk.f32.gmra.mrb[8].mxu0 %vm388_vm0, %v336_v33  ;;  %1461 = vmatprep.subr.bf16.mxu1 %v1460_v39 }
  0x30   : > { %1307 = vmatprep.mubr.msk.f32.mxu0 %vm388_vm0, %v337_v35 }
  0x31   : > { %1483 = vmatpush3.bf16.msra.mxu0 %v1757_v58 }
  0x32   : > { %1463 = vmatpush3.bf16.msra.mxu1 %v1460_v39  ;;  %1485 = vmatprep.subr.bf16.mxu0 %v1766_v61 }
  0x33   : > { %1308 = vmatmul.mubr.msk.f32.gmra.mrb[10].mxu0 %vm388_vm0, %v338_v38  ;;  %1465 = vmatprep.subr.bf16.mxu1 %v1464_v46 }
  0x34   : > { %1310 = vmatprep.mubr.msk.f32.mxu0 %vm388_vm0, %v339_v40 }
  0x35   : > { %1487 = vmatpush3.bf16.msra.mxu0 %v1766_v61 }
  0x36   : > { %1467 = vmatpush3.bf16.msra.mxu1 %v1464_v46  ;;  %1489 = vmatprep.subr.bf16.mxu0 %v1776_v0 }
  0x37   : > { %1311 = vmatmul.mubr.msk.f32.gmra.mrb[12].mxu0 %vm388_vm0, %v340_v41  ;;  %1500 = vmatprep.subr.bf16.mxu1 %v1468_v50 }
  0x38   : > { %1313 = vmatprep.mubr.msk.f32.mxu0 %vm388_vm0, %v341_v42 }
  0x39   : > { %1491 = vmatpush3.bf16.msra.mxu0 %v1776_v0 }
  0x3a   : > { %1493 = vmatprep.subr.bf16.mxu0 %v1786_v3 }
  0x3b   : > { %1314 = vmatmul.mubr.msk.f32.gmra.mrb[14].mxu0 %vm388_vm0, %v342_v43 }
  0x3d   : > { %1495 = vmatpush3.bf16.msra.mxu0 %v1786_v3 }
  0xf2   : > { %v1294_v5 = vpop.f32.mrb[0].mxu0 }
  0xf3   : > { %v509_v6 = vadd.f32 %v1294_v5, %v1794_v4  ;;  %v503_v7 = vpop.f32.mrb[1].mxu0 }
  0xf4   : > { %v504_v8 = vadd.f32 %v1794_v4, %v503_v7 }
  0xf5   : > { %v583_v11 = vmax.f32 %v509_v6, 0.0 }
  0xf6   : > { %v1297_v9 = vpop.f32.mrb[2].mxu0  ;;  %v582_v10 = vmax.f32 %v504_v8, 0.0 }
  0xf7   : > { %v519_v12 = vadd.f32 %v1297_v9, %v1794_v4  ;;  %v513_v13 = vpop.f32.mrb[3].mxu0 }
  0xf8   : > { %v514_v14 = vadd.f32 %v1794_v4, %v513_v13  ;;  %1348 = vmatprep.mubr.f32.mxu1 %v582_v10 }
  0xf9   : > { %1349 = vmatmul.mubr.f32.vlgmr.msra.gmra.mrb[0].mxu1 %v583_v11  ;;  %v585_v17 = vmax.f32 %v519_v12, 0.0 }
  0xfa   : > { %v584_v15 = vmax.f32 %v514_v14, 0.0  ;;  %v1300_v16 = vpop.f32.mrb[4].mxu0  ;;  %1508 = vmatpush3.bf16.msra.mxu1 %v1468_v50 }
  0xfb   : > { %v529_v18 = vadd.f32 %v1300_v16, %v1794_v4  ;;  %v523_v19 = vpop.f32.mrb[5].mxu0  ;;  %1501 = vmatprep.subr.bf16.mxu1 %v1472_v52 }
  0xfc   : > { %v524_v20 = vadd.f32 %v1794_v4, %v523_v19  ;;  %1351 = vmatprep.mubr.f32.mxu1 %v584_v15 }
  0xfd   : > { %1352 = vmatmul.mubr.f32.gmra.mrb[2].mxu1 %v585_v17  ;;  %v587_v23 = vmax.f32 %v529_v18, 0.0 }
  0xfe   : > { %v586_v21 = vmax.f32 %v524_v20, 0.0  ;;  %v1303_v22 = vpop.f32.mrb[6].mxu0  ;;  %1509 = vmatpush3.bf16.msra.mxu1 %v1472_v52 }
  0xff   : > { %v539_v24 = vadd.f32 %v1303_v22, %v1794_v4  ;;  %v533_v25 = vpop.f32.mrb[7].mxu0  ;;  %1502 = vmatprep.subr.bf16.mxu1 %v1476_v55 }
 0x100   : > { %v534_v26 = vadd.f32 %v1794_v4, %v533_v25  ;;  %1354 = vmatprep.mubr.f32.mxu1 %v586_v21 }
 0x101   : > { %1355 = vmatmul.mubr.f32.gmra.mrb[4].mxu1 %v587_v23  ;;  %v589_v29 = vmax.f32 %v539_v24, 0.0 }
 0x102   : > { %v588_v27 = vmax.f32 %v534_v26, 0.0  ;;  %v1306_v28 = vpop.f32.mrb[8].mxu0  ;;  %1510 = vmatpush3.bf16.msra.mxu1 %v1476_v55  ;;  %v1496_v55 = vpack.c.bf16 %v380_v54, %v379_v53 }
 0x103   : > { %v549_v30 = vadd.f32 %v1306_v28, %v1794_v4  ;;  %v543_v31 = vpop.f32.mrb[9].mxu0  ;;  %1503 = vmatprep.subr.bf16.mxu1 %v1757_v58 }
 0x104   : > { %v544_v32 = vadd.f32 %v1794_v4, %v543_v31  ;;  %1357 = vmatprep.mubr.f32.mxu1 %v588_v27  ;;  %1497 = vmatprep.subr.bf16.mxu0 %v1496_v55 }
 0x105   : > { %1358 = vmatmul.mubr.f32.gmra.mrb[6].mxu1 %v589_v29  ;;  %v591_v35 = vmax.f32 %v549_v30, 0.0  ;;  %1499 = vmatpush3.bf16.msra.mxu0 %v1496_v55 }
 0x106   : > { %v590_v33 = vmax.f32 %v544_v32, 0.0  ;;  %v1309_v34 = vpop.f32.mrb[10].mxu0  ;;  %1511 = vmatpush3.bf16.msra.mxu1 %v1757_v58 }
 0x107   : > { %v559_v36 = vadd.f32 %v1309_v34, %v1794_v4  ;;  %v553_v37 = vpop.f32.mrb[11].mxu0  ;;  %1504 = vmatprep.subr.bf16.mxu1 %v1766_v61 }
 0x108   : > { %v554_v38 = vadd.f32 %v1794_v4, %v553_v37  ;;  %1360 = vmatprep.mubr.f32.mxu1 %v590_v33 }
 0x109   : > { %1361 = vmatmul.mubr.f32.gmra.mrb[8].mxu1 %v591_v35  ;;  %v593_v41 = vmax.f32 %v559_v36, 0.0 }
 0x10a   : > { %v592_v39 = vmax.f32 %v554_v38, 0.0  ;;  %v1312_v40 = vpop.f32.mrb[12].mxu0  ;;  %1512 = vmatpush3.bf16.msra.mxu1 %v1766_v61 }
 0x10b   : > { %v569_v42 = vadd.f32 %v1312_v40, %v1794_v4  ;;  %v563_v43 = vpop.f32.mrb[13].mxu0  ;;  %1505 = vmatprep.subr.bf16.mxu1 %v1776_v0 }
 0x10c   : > { %v564_v44 = vadd.f32 %v1794_v4, %v563_v43  ;;  %1363 = vmatprep.mubr.f32.mxu1 %v592_v39 }
 0x10d   : > { %1364 = vmatmul.mubr.f32.gmra.mrb[10].mxu1 %v593_v41  ;;  %v595_v47 = vmax.f32 %v569_v42, 0.0  ;;  %v932_v41 = vlaneseq }
 0x10e   : > { %v594_v45 = vmax.f32 %v564_v44, 0.0  ;;  %v1315_v46 = vpop.f32.mrb[14].mxu0  ;;  %1513 = vmatpush3.bf16.msra.mxu1 %v1776_v0  ;;  %v1833_v44 = vstv %s1194_s18 }
 0x10f   : > { %v579_v48 = vadd.f32 %v1315_v46, %v1794_v4  ;;  %v573_v49 = vpop.f32.mrb[15].mxu0  ;;  %1506 = vmatprep.subr.bf16.mxu1 %v1786_v3  ;;  %v1829_v42 = vshrl.u32 %v932_v41, 7 }
 0x110   : > { %v574_v50 = vadd.f32 %v1794_v4, %v573_v49  ;;  %1366 = vmatprep.mubr.f32.mxu1 %v594_v45 }
 0x111   : > { %1367 = vmatmul.mubr.f32.gmra.mrb[12].mxu1 %v595_v47  ;;  %v597_v52 = vmax.f32 %v579_v48, 0.0  ;;  %v934_v43 = vadd.s32 8, %v1829_v42  ;;  %v936_v45 = vadd.s32 24, %v1829_v42  ;;  %v935_v46 = vadd.s32 16, %v1829_v42  ;;  %v1840_v47 = vld [vmem:[%s1948_s6] ss:$0 sm:$0xff] }
 0x112   : > { %v596_v51 = vmax.f32 %v574_v50, 0.0  ;;  %1514 = vmatpush3.bf16.msra.mxu1 %v1786_v3  ;;  %v938_v49 = vadd.s32 40, %v1829_v42  ;;  %v951_v50 = vadd.s32 %v1833_v44, %v1829_v42 }
 0x113   : > { %1507 = vmatprep.subr.bf16.mxu1 %v1496_v55  ;;  %v952_v48 = vadd.s32 %v1833_v44, %v934_v43  ;;  %v953_v53 = vadd.s32 %v1833_v44, %v935_v46 }
 0x114   : > { %1369 = vmatprep.mubr.f32.mxu1 %v596_v51  ;;  %v954_v51 = vadd.s32 %v1833_v44, %v936_v45  ;;  %vm967_vm2 = vcmp.lt.s32.totalorder %v951_v50, 200  ;;  %v946_v50 = vadd.s32 104, %v1829_v42 }
 0x115   : > { %1370 = vmatmul.mubr.f32.gmra.mrb[14].mxu1 %v597_v52  ;;  %vm968_vm1 = vcmp.lt.s32.totalorder %v952_v48, 200  ;;  %vm969_vm4 = vcmp.lt.s32.totalorder %v953_v53, 200 }
 0x116   : > { %1515 = vmatpush3.bf16.msra.mxu1 %v1496_v55  ;;  %vm970_vm3 = vcmp.lt.s32.totalorder %v954_v51, 200  ;;  %v945_v51 = vadd.s32 96, %v1829_v42 }
 0x1cc   : > { %v1350_v57 = vpop.f32.mrb[0].mxu1 }
 0x1cd   : > { %v676_v58 = vadd.f32 %v1350_v57, %v1192_v56  ;;  %v670_v59 = vpop.f32.mrb[1].mxu1  ;;  %v940_v57 = vadd.s32 56, %v1829_v42 }
 0x1ce   : > { %v671_v60 = vadd.f32 %v1192_v56, %v670_v59  ;;  %v956_v59 = vadd.s32 %v1833_v44, %v938_v49 }
 0x1cf   : > { %v750_v63 = vmax.f32 %v676_v58, 0.0 }
 0x1d0   : > { %v749_v61 = vmax.f32 %v671_v60, 0.0  ;;  %v1353_v62 = vpop.f32.mrb[2].mxu1  ;;  %vm972_vm5 = vcmp.lt.s32.totalorder %v956_v59, 200 }
 0x1d1   : > { %v686_v0 = vadd.f32 %v1353_v62, %v1192_v56  ;;  %v680_v1 = vpop.f32.mrb[3].mxu1 }
 0x1d2   : > { %v681_v2 = vadd.f32 %v1192_v56, %v680_v1  ;;  %1404 = vmatprep.mubr.f32.mxu0 %v749_v61  ;;  %v939_v61 = vadd.s32 48, %v1829_v42  ;;  %v941_v1 = vadd.s32 64, %v1829_v42 }
 0x1d3   : > { %1405 = vmatmul.mubr.f32.vlgmr.msra.gmra.mrb[16].mxu0 %v750_v63  ;;  %v752_v5 = vmax.f32 %v686_v0, 0.0  ;;  %v942_v0 = vadd.s32 72, %v1829_v42 }
 0x1d4   : > { %v751_v3 = vmax.f32 %v681_v2, 0.0  ;;  %v1356_v4 = vpop.f32.mrb[4].mxu1 }
 0x1d5   : > { %v696_v6 = vadd.f32 %v1356_v4, %v1192_v56  ;;  %v690_v7 = vpop.f32.mrb[5].mxu1 }
 0x1d6   : > { %v691_v8 = vadd.f32 %v1192_v56, %v690_v7  ;;  %1407 = vmatprep.mubr.f32.mxu0 %v751_v3 }
 0x1d7   : > { %1408 = vmatmul.mubr.f32.gmra.mrb[18].mxu0 %v752_v5  ;;  %v754_v11 = vmax.f32 %v696_v6, 0.0  ;;  %v958_v6 = vadd.s32 %v1833_v44, %v940_v57 }
 0x1d8   : > { %v753_v9 = vmax.f32 %v691_v8, 0.0  ;;  %v1359_v10 = vpop.f32.mrb[6].mxu1 }
 0x1d9   : > { %v706_v12 = vadd.f32 %v1359_v10, %v1192_v56  ;;  %v700_v13 = vpop.f32.mrb[7].mxu1  ;;  %vm974_vm7 = vcmp.lt.s32.totalorder %v958_v6, 200 }
 0x1da   : > { %v701_v14 = vadd.f32 %v1192_v56, %v700_v13  ;;  %1410 = vmatprep.mubr.f32.mxu0 %v753_v9  ;;  %v957_v13 = vadd.s32 %v1833_v44, %v939_v61 }
 0x1db   : > { %1411 = vmatmul.mubr.f32.gmra.mrb[20].mxu0 %v754_v11  ;;  %v756_v17 = vmax.f32 %v706_v12, 0.0 }
 0x1dc   : > { %v755_v15 = vmax.f32 %v701_v14, 0.0  ;;  %v1362_v16 = vpop.f32.mrb[8].mxu1  ;;  %vm973_vm8 = vcmp.lt.s32.totalorder %v957_v13, 200  ;;  %v947_v13 = vadd.s32 112, %v1829_v42 }
 0x1dd   : > { %v716_v18 = vadd.f32 %v1362_v16, %v1192_v56  ;;  %v710_v19 = vpop.f32.mrb[9].mxu1  ;;  %v1862_v16 = vadd.s32 %v1833_v44, %v942_v0 }
 0x1de   : > { %v711_v20 = vadd.f32 %v1192_v56, %v710_v19  ;;  %1413 = vmatprep.mubr.f32.mxu0 %v755_v15 }
 0x1df   : > { %1414 = vmatmul.mubr.f32.gmra.mrb[22].mxu0 %v756_v17  ;;  %v758_v23 = vmax.f32 %v716_v18, 0.0  ;;  %v1865_v17 = vadd.s32 %v1833_v44, %v941_v1  ;;  %v944_v18 = vadd.s32 88, %v1829_v42  ;;  %vm976_vm9 = vcmp.lt.s32.totalorder %v1862_v16, 200 }
 0x1e0   : > { %v757_v21 = vmax.f32 %v711_v20, 0.0  ;;  %v1365_v22 = vpop.f32.mrb[10].mxu1 }
 0x1e1   : > { %v726_v24 = vadd.f32 %v1365_v22, %v1192_v56  ;;  %v720_v25 = vpop.f32.mrb[11].mxu1  ;;  %vm975_vm10 = vcmp.lt.s32.totalorder %v1865_v17, 200 }
 0x1e2   : > { %v721_v26 = vadd.f32 %v1192_v56, %v720_v25  ;;  %1416 = vmatprep.mubr.f32.mxu0 %v757_v21  ;;  %v943_v25 = vadd.s32 80, %v1829_v42 }
 0x1e3   : > { %1417 = vmatmul.mubr.f32.gmra.mrb[24].mxu0 %v758_v23  ;;  %v760_v29 = vmax.f32 %v726_v24, 0.0 }
 0x1e4   : > { %v759_v27 = vmax.f32 %v721_v26, 0.0  ;;  %v1368_v28 = vpop.f32.mrb[12].mxu1 }
 0x1e5   : > { %v736_v30 = vadd.f32 %v1368_v28, %v1192_v56  ;;  %v730_v31 = vpop.f32.mrb[13].mxu1 }
 0x1e6   : > { %v731_v32 = vadd.f32 %v1192_v56, %v730_v31  ;;  %1419 = vmatprep.mubr.f32.mxu0 %v759_v27  ;;  %v962_v31 = vadd.s32 %v1833_v44, %v944_v18 }
 0x1e7   : > { %1420 = vmatmul.mubr.f32.gmra.mrb[26].mxu0 %v760_v29  ;;  %v762_v35 = vmax.f32 %v736_v30, 0.0 }
 0x1e8   : > { %v761_v33 = vmax.f32 %v731_v32, 0.0  ;;  %v1371_v34 = vpop.f32.mrb[14].mxu1  ;;  %vm978_vm11 = vcmp.lt.s32.totalorder %v962_v31, 200 }
 0x1e9   : > { %v746_v36 = vadd.f32 %v1371_v34, %v1192_v56  ;;  %v740_v37 = vpop.f32.mrb[15].mxu1 }
 0x1ea   : > { %v741_v38 = vadd.f32 %v1192_v56, %v740_v37  ;;  %1422 = vmatprep.mubr.f32.mxu0 %v761_v33  ;;  %v937_v56 = vadd.s32 32, %v1829_v42 }
 0x1eb   : > { %1423 = vmatmul.mubr.f32.gmra.mrb[28].mxu0 %v762_v35  ;;  %v764_v40 = vmax.f32 %v746_v36, 0.0 }
 0x1ec   : > { %v763_v39 = vmax.f32 %v741_v38, 0.0  ;;  %v955_v5 = vadd.s32 %v1833_v44, %v937_v56 }
 0x1ee   : > { %1425 = vmatprep.mubr.f32.mxu1 %v763_v39  ;;  %vm971_vm6 = vcmp.lt.s32.totalorder %v955_v5, 200 }
 0x1ef   : > { %1426 = vmatmul.mubr.f32.vlgmr.msra.gmra.mrb[16].mxu1 %v764_v40  ;;  %v961_v40 = vadd.s32 %v1833_v44, %v943_v25 }
 0x1f1   : > { %vm977_vm12 = vcmp.lt.s32.totalorder %v961_v40, 200 }
 0x2a6   : > { %v1406_v52 = vpop.f32.mrb[16].mxu0 }
 0x2a7   : > { %v843_v54 = vadd.f32 %v1406_v52, %v1840_v47  ;;  %v837_v55 = vpop.f32.mrb[17].mxu0 }
 0x2a8   : > { %v838_v58 = vadd.f32 %v1840_v47, %v837_v55 }
 0x2a9   : > { %v917_v60 = vmax.f32 %v843_v54, 0.0 }
 0x2aa   : > { %v916_v62 = vmax.f32 %v838_v58, 0.0  ;;  %v1409_v63 = vpop.f32.mrb[18].mxu0 }
 0x2ab   : > { %v1016_v2 = vsel %vm968_vm1, %v917_v60, 0.0  ;;  %v853_v3 = vadd.f32 %v1409_v63, %v1840_v47  ;;  %v847_v4 = vpop.f32.mrb[19].mxu0  ;;  %vm1119_vm1 = vcmask (!%p1195_p5), 1040384  }
 0x2ac   : > { %v1057_v7 = vmul.f32 %v1016_v2, %v1016_v2  ;;  %v1015_v8 = vsel %vm967_vm2, %v916_v62, 0.0  ;;  %v848_v9 = vadd.f32 %v1840_v47, %v847_v4  ;;  %v948_v4 = vadd.s32 120, %v1829_v42 }
 0x2ad   : > { %v1032_v10 = vadd.f32 %v1016_v2, %v1015_v8  ;;  %v1056_v11 = vmul.f32 %v1015_v8, %v1015_v8  ;;  %v919_v12 = vmax.f32 %v853_v3, 0.0  ;;  %v964_v2 = vadd.s32 %v1833_v44, %v946_v50 }
 0x2ae   : > { %v918_v14 = vmax.f32 %v848_v9, 0.0  ;;  %v1412_v15 = vpop.f32.mrb[20].mxu0  ;;  %v963_v3 = vadd.s32 %v1833_v44, %v945_v51 }
 0x2af   : > { %v1072_v19 = vadd.f32 %v1057_v7, %v1056_v11  ;;  %v863_v20 = vadd.f32 %v1412_v15, %v1840_v47  ;;  %v857_v21 = vpop.f32.mrb[21].mxu0  ;;  %v1018_v22 = vsel %vm970_vm3, %v919_v12, 0.0  ;;  %vm980_vm13 = vcmp.lt.s32.totalorder %v964_v2, 200 }
 0x2b0   : > { %v1017_v23 = vsel %vm969_vm4, %v918_v14, 0.0  ;;  %v858_v24 = vadd.f32 %v1840_v47, %v857_v21  ;;  %v1059_v32 = vmul.f32 %v1018_v22, %v1018_v22  ;;  %vm979_vm14 = vcmp.lt.s32.totalorder %v963_v3, 200 }
 0x2b1   : > { %v1033_v26 = vadd.f32 %v1032_v10, %v1017_v23  ;;  %v1058_v27 = vmul.f32 %v1017_v23, %v1017_v23  ;;  %v921_v28 = vmax.f32 %v863_v20, 0.0 }
 0x2b2   : > { %v920_v29 = vmax.f32 %v858_v24, 0.0  ;;  %v1415_v30 = vpop.f32.mrb[22].mxu0 }
 0x2b3   : > { %v1073_v33 = vadd.f32 %v1072_v19, %v1058_v27  ;;  %v1034_v34 = vadd.f32 %v1033_v26, %v1018_v22  ;;  %v873_v35 = vadd.f32 %v1415_v30, %v1840_v47  ;;  %v867_v36 = vpop.f32.mrb[23].mxu0  ;;  %v1020_v37 = vsel %vm972_vm5, %v921_v28, 0.0 }
 0x2b4   : > { %v1019_v38 = vsel %vm971_vm6, %v920_v29, 0.0  ;;  %v868_v39 = vadd.f32 %v1840_v47, %v867_v36  ;;  %v1061_v52 = vmul.f32 %v1020_v37, %v1020_v37  ;;  %v966_v22 = vadd.s32 %v1833_v44, %v948_v4 }
 0x2b5   : > { %v1035_v41 = vadd.f32 %v1034_v34, %v1019_v38  ;;  %v1060_v43 = vmul.f32 %v1019_v38, %v1019_v38  ;;  %v1074_v45 = vadd.f32 %v1073_v33, %v1059_v32  ;;  %v923_v46 = vmax.f32 %v873_v35, 0.0 }
 0x2b6   : > { %v922_v48 = vmax.f32 %v868_v39, 0.0  ;;  %v1418_v49 = vpop.f32.mrb[24].mxu0  ;;  %v965_v29 = vadd.s32 %v1833_v44, %v947_v13  ;;  %vm982_vm15 = vcmp.lt.s32.totalorder %v966_v22, 200 }
 0x2b7   : > { %v1075_v53 = vadd.f32 %v1074_v45, %v1060_v43  ;;  %v1036_v54 = vadd.f32 %v1035_v41, %v1020_v37  ;;  %v883_v55 = vadd.f32 %v1418_v49, %v1840_v47  ;;  %v877_v56 = vpop.f32.mrb[25].mxu0  ;;  %v1022_v57 = vsel %vm974_vm7, %v923_v46, 0.0 }
 0x2b8   : > { %v1021_v58 = vsel %vm973_vm8, %v922_v48, 0.0  ;;  %v878_v59 = vadd.f32 %v1840_v47, %v877_v56  ;;  %v1063_v5 = vmul.f32 %v1022_v57, %v1022_v57  ;;  %vm981_vm0 = vcmp.lt.s32.totalorder %v965_v29, 200 }
 0x2b9   : > { %v1037_v60 = vadd.f32 %v1036_v54, %v1021_v58  ;;  %v1062_v61 = vmul.f32 %v1021_v58, %v1021_v58  ;;  %v1076_v62 = vadd.f32 %v1075_v53, %v1061_v52  ;;  %v925_v63 = vmax.f32 %v883_v55, 0.0 }
 0x2ba   : > { %v924_v0 = vmax.f32 %v878_v59, 0.0  ;;  %v1421_v1 = vpop.f32.mrb[26].mxu0 }
 0x2bb   : > { %v1077_v6 = vadd.f32 %v1076_v62, %v1062_v61  ;;  %v1038_v7 = vadd.f32 %v1037_v60, %v1022_v57  ;;  %v893_v8 = vadd.f32 %v1421_v1, %v1840_v47  ;;  %v887_v9 = vpop.f32.mrb[27].mxu0  ;;  %v1024_v10 = vsel %vm976_vm9, %v925_v63, 0.0 }
 0x2bc   : > { %v1023_v11 = vsel %vm975_vm10, %v924_v0, 0.0  ;;  %v888_v12 = vadd.f32 %v1840_v47, %v887_v9  ;;  %v1065_v23 = vmul.f32 %v1024_v10, %v1024_v10 }
 0x2bd   : > { %v1039_v14 = vadd.f32 %v1038_v7, %v1023_v11  ;;  %v1064_v15 = vmul.f32 %v1023_v11, %v1023_v11  ;;  %v1078_v18 = vadd.f32 %v1077_v6, %v1063_v5  ;;  %v927_v19 = vmax.f32 %v893_v8, 0.0  ;;  %v1031_v7 = vld [vmem:[#allocation2] sm:$0x1] }
 0x2be   : > { %v926_v20 = vmax.f32 %v888_v12, 0.0  ;;  %v1424_v21 = vpop.f32.mrb[28].mxu0 }
 0x2bf   : > { %v1079_v16 = vadd.f32 %v1078_v18, %v1064_v15  ;;  %v1040_v24 = vadd.f32 %v1039_v14, %v1024_v10  ;;  %v903_v17 = vadd.f32 %v1424_v21, %v1840_v47  ;;  %v897_v25 = vpop.f32.mrb[29].mxu0  ;;  %v1026_v26 = vsel %vm978_vm11, %v927_v19, 0.0  ;;  %v1055_v10 = vld [vmem:[#allocation3] sm:$0x1] }
 0x2c0   : > { %v1025_v27 = vsel %vm977_vm12, %v926_v20, 0.0  ;;  %v898_v28 = vadd.f32 %v1840_v47, %v897_v25  ;;  %v1067_v37 = vmul.f32 %v1026_v26, %v1026_v26  ;;  %v1110_v25 = vld [vmem:[%s1950_s8] sm:$0x1] (!%p1195_p5) }
 0x2c1   : > { %v1041_v30 = vadd.f32 %v1040_v24, %v1025_v27  ;;  %v1066_v32 = vmul.f32 %v1025_v27, %v1025_v27  ;;  %v1080_v33 = vadd.f32 %v1079_v16, %v1065_v23  ;;  %v929_v34 = vmax.f32 %v903_v17, 0.0  ;;  %v1108_v16 = vld [vmem:[%s1949_s7] sm:$0x1] (!%p1195_p5) }
 0x2c2   : > { %v928_v35 = vmax.f32 %v898_v28, 0.0  ;;  %v1427_v36 = vpop.f32.mrb[16].mxu1  ;;  %v1116_v27 = vsub.s32 (!%p1195_p5), 0, %v1829_v42 }
 0x2c3   : > { %v1081_v38 = vadd.f32 %v1080_v33, %v1066_v32  ;;  %v1042_v39 = vadd.f32 %v1041_v30, %v1026_v26  ;;  %v913_v41 = vadd.f32 %v1427_v36, %v1840_v47  ;;  %v907_v31 = vpop.f32.mrb[17].mxu1  ;;  %v1028_v40 = vsel %vm980_vm13, %v929_v34, 0.0 }
 0x2c4   : > { %v1027_v43 = vsel %vm979_vm14, %v928_v35, 0.0  ;;  %v908_v45 = vadd.f32 %v1840_v47, %v907_v31  ;;  %v1069_v51 = vmul.f32 %v1028_v40, %v1028_v40 }
 0x2c5   : > { %v1043_v44 = vadd.f32 %v1042_v39, %v1027_v43  ;;  %v1068_v46 = vmul.f32 %v1027_v43, %v1027_v43  ;;  %v1082_v48 = vadd.f32 %v1081_v38, %v1067_v37  ;;  %v931_v49 = vmax.f32 %v913_v41, 0.0 }
 0x2c6   : > { %v930_v50 = vmax.f32 %v908_v45, 0.0 }
 0x2c7   : > { %v1083_v52 = vadd.f32 %v1082_v48, %v1068_v46  ;;  %v1044_v53 = vadd.f32 %v1043_v44, %v1028_v40  ;;  %v1030_v54 = vsel %vm982_vm15, %v931_v49, 0.0 }
 0x2c8   : > { %v1029_v55 = vsel %vm981_vm0, %v930_v50, 0.0  ;;  %v1071_v59 = vmul.f32 %v1030_v54, %v1030_v54 }
 0x2c9   : > { %v1045_v56 = vadd.f32 %v1044_v53, %v1029_v55  ;;  %v1070_v57 = vmul.f32 %v1029_v55, %v1029_v55  ;;  %v1084_v58 = vadd.f32 %v1083_v52, %v1069_v51 }
 0x2cb   : > { %v1046_v60 = vadd.f32 %v1045_v56, %v1030_v54  ;;  %v1085_v61 = vadd.f32 %v1084_v58, %v1070_v57 }
 0x2cd   : > { %v1047_v62 = vrot.slane %v1046_v60, 4  ;;  %v1086_v47 = vadd.f32 %v1085_v61, %v1071_v59 }
 0x2cf   : > { %v1048_v63 = vadd.f32 %v1047_v62, %v1046_v60  ;;  %v1087_v0 = vrot.slane %v1086_v47, 4 }
 0x2d1   : > { %v1049_v1 = vrot.slane %v1048_v63, 2  ;;  %v1088_v2 = vadd.f32 %v1087_v0, %v1086_v47 }
 0x2d3   : > { %v1050_v3 = vadd.f32 %v1049_v1, %v1048_v63  ;;  %v1089_v4 = vrot.slane %v1088_v2, 2 }
 0x2d5   : > { %v1051_v5 = vrot.slane %v1050_v3, 1  ;;  %v1090_v6 = vadd.f32 %v1089_v4, %v1088_v2 }
 0x2d7   : > { %v1052_v8 = vadd.f32 %v1051_v5, %v1050_v3  ;;  %v1091_v9 = vrot.slane %v1090_v6, 1  ;;  %1098 = sbr.rel (%p1195_p5) target bundleno = 770 (0x302), region = 64 }
 0x2d9   : > { %v1053_v11 = vadd.f32 %v1052_v8, %v1031_v7  ;;  %v1092_v12 = vadd.f32 %v1091_v9, %v1090_v6 }
 0x2db   : > { %1054 = vst [vmem:[#allocation2] sm:$0x1] %v1053_v11  ;;  %v1093_v13 = vadd.f32 %v1092_v12, %v1055_v10 }
 0x2dd   : > { %1094 = vst [vmem:[#allocation3] sm:$0x1] %v1093_v13 }
 0x2e2   : > { %v1099_v14 = vld [vmem:[#allocation2] sm:$0x1] }
 0x2e3   : > { %v1100_v18 = vmul.f32 0.005, %v1099_v14 }
 0x2e4   : > { %v1101_v15 = vld [vmem:[#allocation3] sm:$0x1] }
 0x2e5   : > { %v1102_v19 = vmul.f32 0.005, %v1101_v15  ;;  %v1103_v20 = vmul.f32 %v1100_v18, %v1100_v18 }
 0x2e7   : > { %v1104_v21 = vsub.f32 %v1102_v19, %v1103_v20 }
 0x2e9   : > { %v1105_v22 = vmax.f32 %v1104_v21, 0.0 }
 0x2eb   : > { %v1106_v23 = vadd.f32 1e-05, %v1105_v22 }
 0x2ed   : > { %1532 = vrsqrt.f32 %v1106_v23 }
 0x2f7   : > { %v1533_v24 = vpop.eup %1532 }
 0x2f8   : > { %v1109_v17 = vmul.f32 %v1533_v24, %v1108_v16 }
 0x2fa   : > { %v1111_v26 = vmul.f32 %v1109_v17, %v1100_v18 }
 0x2fc   : > { %v1112_v28 = vsub.f32 %v1110_v25, %v1111_v26 }
 0x2fe   : > { %v1117_v29 = vrot.slane %v1112_v28, %v1116_v27 }
 0x300   : > { %v1120_v30 = vsel %vm1119_vm1, %v1109_v17, %v1117_v29 }
 0x301   : > { %1121 = vst [vmem:[#allocation4] sm:$0x3] %v1120_v30 }
 0x302 PF: > { %p1520_p6 = scmp.eq.s32.totalorder %s1630_s10, 1  ;;  %s1573_s24 = smov [#allocation4]  }
 0x303   : > { %s1129_s25 = sshll.u32 %s1573_s24, 4  ;;  %s1130_s25 = int_to_ptr.vmem [resolvable:$true] %s1129_s25 }
 0x304   : > { %s1534_s26 = scalar_lea.vmem %s1130_s25, 32  ;;  %p1541_p10 = scmp.lt.s32.totalorder %s1130_s25, %s1130_s25 }
 0x305   : > { %p1535_p7 = scmp.ne.s32.totalorder %s1130_s25, %s1534_s26  ;;  %p1542_p11 = scmp.lt.s32.totalorder %s1534_s26, %s1534_s26 }
 0x307   : > { %p1536_p8 = pnand %p1535_p7, %p1520_p6  ;;  %p1543_p12 = por %p1542_p11, %p1541_p10 }
 0x309   : > { %p1537_p9 = pneg %p1536_p8 }
 0x30b   : > { %p1544_p13 = pnand %p1543_p12, %p1537_p9 }
 0x30d   : > { %1547 = shalt.err (!%p1544_p13)
}
 0x30e   : > { %s1548_s29 = scalar_lea.hbm %s1951_s9, 32 }
 0x30f   : > { %p1549_p0 = scmp.ne.s32.totalorder %s1951_s9, %s1548_s29  ;;  %p1554_p3 = scmp.lt.u32.totalorder %s1548_s29, %s1951_s9 }
 0x311   : > { %p1550_p1 = pnand %p1549_p0, %p1520_p6 }
 0x313   : > { %p1551_p2 = pneg %p1550_p1 }
 0x315   : > { %p1556_p4 = pnand %p1554_p3, %p1551_p2 }
 0x317   : > { %1559 = shalt.err (!%p1556_p4)
}
 0x318   : > { %1517 = dma.vmem_to_hbm [thread:$0]  (%p1520_p6), %s1130_s25, 32, %s1951_s9, [#allocation5]  }
 0x319   : > { %1565 = dma.done.wait (%p1520_p6), [#allocation5], 32  }
 0x31a   : > { %1567 = vsyncadd (%p1520_p6), [#allocation5], 4294967264 }
 0x31b PF: > { %s20_s30 = sadd.s32 1, %s1570_s30  }
 0x31c   : > { %p17_p5 = scmp.ge.s32.totalorder %s20_s30, 4  }
 0x31e   :  { %19 = sbr.rel (!%p17_p5) target bundleno = 1 (0x1), region = 91 }
 0x325   :  { %1142 = vsyncpa [#allocation5], 1 }
 0x326   :  { %1144 = vsyncpa [#allocation5 + $0x1], 1 }

</bundles_post_ra>
